<compile_context>
chip_gen: v7x
topology: tpu7x:2x2x1
jax: 0.10.0
libtpu: 0.0.40
codegen_flags: <defaults>
</compile_context>

<pallas_src>
import functools

import numpy as np
import jax
import jax.numpy as jnp
from jax.experimental import pallas as pl
from jax.experimental.pallas import tpu as pltpu


# ---------------------------------------------------------------------------
# helpers
# ---------------------------------------------------------------------------
def _single_tensorcore_chip() -> bool:
    """True on single-TensorCore chips (v5e/v6e): merge the batch into one grid step.
    False (default) keeps one image per grid step so a 'parallel' grid axis can be
    sharded across cores on v7x / megacore parts."""
    try:
        kind = jax.devices()[0].device_kind.lower()
    except Exception:
        return False
    return any(t in kind for t in ("v5e", "v5 lite", "v5lite", "v6e", "v6 lite", "v6lite"))


def _build_tap_masks(K, pad, H, W):
    """(K*K, H*W) float32 border masks.

    masks[t, y*W + x] == 1  iff  (y+dy, x+dx) lies inside the HxW image, where
    t = ky*K + kx and (dy, dx) = (ky - pad, kx - pad).  Multiplying the lane-rolled
    image by this mask reproduces zero-padded convolution windows without any padded
    image buffer (the roll wraps, the mask zeros the wrapped border elements).
    """
    ys, xs = np.meshgrid(np.arange(H), np.arange(W), indexing="ij")
    masks = np.zeros((K * K, H * W), np.float32)
    for ky in range(K):
        for kx in range(K):
            dy, dx = ky - pad, kx - pad
            ok = ((ys + dy >= 0) & (ys + dy < H) &
                  (xs + dx >= 0) & (xs + dx < W))
            masks[ky * K + kx] = ok.reshape(-1).astype(np.float32)
    return jnp.asarray(masks)


# ---------------------------------------------------------------------------
# fused kernel: per image ->  im2col -> (conv1 || upscale) one matmul -> ReLU
#                          ->  im2col -> conv2 + residual + ReLU, all in VMEM.
# Everything (cols, h, res, output) keeps HW=H*W on the lane axis (lane-dense).
# ---------------------------------------------------------------------------
def _equi_res_block_kernel(x_ref, m_ref, wc_ref, bc_ref, w2_ref, b2_ref,
                           o_ref, col1, col2, *,
                           K, H, W, images, cin, chid, has_upscale):
    HW = H * W
    pad = (K - 1) // 2
    f32 = jnp.float32
    taps = [(ky, kx) for ky in range(K) for kx in range(K)]

    wc = wc_ref[...]                      # (Cout_c, K*K*cin)  - resident, tiny
    w2 = w2_ref[...]                      # (chid,  K*K*chid)
    bc = bc_ref[...].astype(f32)          # (Cout_c, 1)
    b2 = b2_ref[...].astype(f32)          # (chid, 1)

    def im2col(img, col, c):
        # img: (c, HW) f32 value (lane-dense); col: VMEM ref (K*K*c, HW).
        # Each row block is a dense (c, HW) slab: lane roll (XLU) + border-mask
        # multiply (VPU); no lane-masked narrow stores, no padded image buffer.
        for t, (ky, kx) in enumerate(taps):
            d = (ky - pad) * W + (kx - pad)
            if d == 0:
                slab = img                                     # centre tap: mask is all ones
            else:
                slab = pltpu.roll(img, (-d) % HW, axis=1) * m_ref[t:t + 1, :]
            col[t * c:(t + 1) * c, :] = slab.astype(col.dtype)

    for g in range(images):
        xg = x_ref[g].astype(f32)                              # (cin, HW), lane-dense

        # ---- stage 1: shared im2col, then conv1 (+ fused upscale conv) -----
        im2col(xg, col1, cin)
        hc = jnp.dot(wc, col1[...], preferred_element_type=f32) + bc   # (Cout_c, HW)
        h = jnp.maximum(hc[:chid], 0.0)                        # (chid, HW) - 4 dense vregs
        res = hc[chid:] if has_upscale else xg                 # (chid, HW) - 4 dense vregs

        # ---- stage 2: im2col of h, conv2 + bias + residual + ReLU ----------
        im2col(h, col2, chid)
        out = jnp.dot(w2, col2[...], preferred_element_type=f32)
        out = jnp.maximum(out + b2 + res, 0.0)
        o_ref[g] = out.astype(o_ref.dtype)                     # full-lane (chid, HW) store


# ---------------------------------------------------------------------------
# wrapper
# ---------------------------------------------------------------------------
def equi_res_block_forward(x_nchw, params, *, kernel_size, padding=True,
                           operand_dtype=jnp.float32, images_per_step=None):
    """EquiResBlock.forward.  x_nchw: (B, Cin_eff, H, W) -> (B, Chid_eff, H, W)."""
    B, Cin, H, W = x_nchw.shape
    K = kernel_size
    pad1 = (K - 1) // 2
    Chid = params["w1"].shape[-1]
    has_upscale = "w_up" in params

    if not padding:
        # TODO(synk): padding=False (valid-conv residual) not implemented in the Pallas
        # kernel; use the pure-JAX reference path to preserve module semantics.
        return _ref_forward(x_nchw, params, kernel_size=K, padding=False)
    if K % 2 != 1:
        raise NotImplementedError("Pallas path assumes odd kernel_size")
    if not has_upscale and Cin != Chid:
        raise ValueError("identity residual requires Cin == Chid")

    HW = H * W

    # ---- weight prep (transposed so the lane/contraction dim is K*K*C) -----
    def prep_w(w):        # (K, K, Ci, Co) HWIO -> (Co, K*K*Ci); row order matches col rows.
        return jnp.transpose(w.reshape(K * K * w.shape[2], w.shape[3]))

    w1t = prep_w(params["w1"])
    w2t = prep_w(params["w2"]).astype(operand_dtype)
    b1 = params["b1"].reshape(Chid, 1).astype(jnp.float32)
    b2 = params["b2"].reshape(Chid, 1).astype(jnp.float32)
    if has_upscale:
        # Fuse conv1 and upscale into one matmul over the shared col1.
        wut = prep_w(params["w_up"])
        bu = params["b_up"].reshape(Chid, 1).astype(jnp.float32)
        wc = jnp.concatenate([w1t, wut], axis=0).astype(operand_dtype)   # (2*Chid, K*K*Cin)
        bc = jnp.concatenate([b1, bu], axis=0)                           # (2*Chid, 1)
    else:
        wc = w1t.astype(operand_dtype)
        bc = b1
    cout_c = wc.shape[0]

    # Channel-major, lane-dense input: a FREE reshape of NCHW (no transpose).
    x_cm = x_nchw.reshape(B, Cin, HW)
    masks = _build_tap_masks(K, pad1, H, W)

    # Images per grid step: whole batch on single-TC chips, 1/step on multi-core chips.
    G = images_per_step
    if G is None:
        G = B if _single_tensorcore_chip() else 1
    if G < 1 or B % G != 0:
        G = 1

    kernel = functools.partial(_equi_res_block_kernel, K=K, H=H, W=W,
                               images=G, cin=Cin, chid=Chid,
                               has_upscale=has_upscale)

    op_bytes = jnp.dtype(operand_dtype).itemsize
    flops = 2 * B * HW * (K * K * Cin * cout_c + K * K * Chid * Chid)
    bytes_accessed = int(4 * (x_cm.size + B * Chid * HW + masks.size + bc.size + b2.size)
                         + op_bytes * (wc.size + w2t.size))

    out = pl.pallas_call(
        kernel,
        out_shape=jax.ShapeDtypeStruct((B, Chid, HW), x_nchw.dtype),
        grid=(B // G,),
        in_specs=[
            pl.BlockSpec((G, Cin, HW), lambda n: (n, 0, 0)),      # x (channel-major)
            pl.BlockSpec(masks.shape, lambda n: (0, 0)),          # border masks
            pl.BlockSpec(wc.shape, lambda n: (0, 0)),             # fused conv1|upscale weights
            pl.BlockSpec(bc.shape, lambda n: (0, 0)),             # fused biases
            pl.BlockSpec(w2t.shape, lambda n: (0, 0)),            # conv2 weights
            pl.BlockSpec(b2.shape, lambda n: (0, 0)),             # conv2 bias
        ],
        out_specs=pl.BlockSpec((G, Chid, HW), lambda n: (n, 0, 0)),
        scratch_shapes=[
            pltpu.VMEM((K * K * Cin, HW), operand_dtype),         # col1 (shared by conv1+upscale)
            pltpu.VMEM((K * K * Chid, HW), operand_dtype),        # col2
        ],
        compiler_params=pltpu.CompilerParams(
            dimension_semantics=("parallel",),
            vmem_limit_bytes=32 * 1024 * 1024),
        cost_estimate=pl.CostEstimate(flops=int(flops), transcendentals=0,
                                      bytes_accessed=bytes_accessed),
    )(x_cm, masks, wc, bc, w2t, b2)

    # (B, Chid, H*W) is already NCHW up to a free spatial un-flatten.
    return out.reshape(B, Chid, H, W)


# ---------------------------------------------------------------------------
# Pure-JAX reference (correctness check + padding=False fallback)
# ---------------------------------------------------------------------------
def _ref_conv(x, w, b, pad):
    y = jax.lax.conv_general_dilated(
        x, w, window_strides=(1, 1), padding=[(pad, pad), (pad, pad)],
        dimension_numbers=("NHWC", "HWIO", "NHWC"),
        precision=jax.lax.Precision.HIGHEST)
    return y + b


def _ref_forward(x_nchw, params, *, kernel_size, padding=True):
    x = jnp.transpose(x_nchw, (0, 2, 3, 1))
    pad1 = (kernel_size - 1) // 2
    pad2 = pad1 if padding else 0
    h = jax.nn.relu(_ref_conv(x, params["w1"], params["b1"], pad1))
    res = (_ref_conv(x, params["w_up"], params["b_up"], pad2)
           if "w_up" in params else x)
    out = jax.nn.relu(_ref_conv(h, params["w2"], params["b2"], pad2) + res)
    return jnp.transpose(out, (0, 3, 1, 2))


# ---------------------------------------------------------------------------
if __name__ == "__main__":
    # Module config: input_channels=4, hidden_dim=8, kernel_size=3, N=4,
    # flip=False, quotient=True, padding=True  ->  rep size = N//2 = 2.
    N_rot = 4
    rep = N_rot // 2
    input_channels, hidden_dim, K = 4, 8, 3
    Cin, Chid = input_channels * rep, hidden_dim * rep          # 8, 16
    B, H, W = 2, 16, 16

    key = jax.random.PRNGKey(0)
    ks = jax.random.split(key, 8)
    x = jax.random.normal(ks[0], (B, Cin, H, W), jnp.float32)

    s = 0.1
    params = {
        "w1": jax.random.normal(ks[1], (K, K, Cin, Chid), jnp.float32) * s,
        "b1": jax.random.normal(ks[2], (Chid,), jnp.float32) * s,
        "w2": jax.random.normal(ks[3], (K, K, Chid, Chid), jnp.float32) * s,
        "b2": jax.random.normal(ks[4], (Chid,), jnp.float32) * s,
        # upscale conv exists because input_channels != hidden_dim
        "w_up": jax.random.normal(ks[5], (K, K, Cin, Chid), jnp.float32) * s,
        "b_up": jax.random.normal(ks[6], (Chid,), jnp.float32) * s,
    }

    ref = _ref_forward(x, params, kernel_size=K, padding=True)

    # f32 MXU operands (default path).
    out_f32 = jax.block_until_ready(
        equi_res_block_forward(x, params, kernel_size=K, padding=True))
    assert out_f32.shape == (B, Chid, H, W), out_f32.shape
    assert jnp.allclose(out_f32, ref, atol=1e-2, rtol=1e-2), (
        float(jnp.max(jnp.abs(out_f32 - ref))))

    # bf16 MXU operands / f32 accumulate (v6e/v7x-native MXU path).
    out_bf16 = jax.block_until_ready(
        equi_res_block_forward(x, params, kernel_size=K, padding=True,
                               operand_dtype=jnp.bfloat16))
    assert out_bf16.shape == (B, Chid, H, W), out_bf16.shape
    assert jnp.allclose(out_bf16, ref, atol=5e-2, rtol=5e-2), (
        float(jnp.max(jnp.abs(out_bf16 - ref))))

    print("KERNEL_OK")
</pallas_src>

<mosaic_0001>
module attributes {stable_mosaic.version = 11 : i64} {
  func.func @_equi_res_block_kernel(%arg0: i32, %arg1: memref<1x8x256xf32, #tpu.memory_space<vmem>>, %arg2: memref<9x256xf32, #tpu.memory_space<vmem>>, %arg3: memref<32x72xf32, #tpu.memory_space<vmem>>, %arg4: memref<32x1xf32, #tpu.memory_space<vmem>>, %arg5: memref<16x144xf32, #tpu.memory_space<vmem>>, %arg6: memref<16x1xf32, #tpu.memory_space<vmem>>, %arg7: memref<1x16x256xf32, #tpu.memory_space<vmem>>, %arg8: memref<72x256xf32, #tpu.memory_space<vmem>>, %arg9: memref<144x256xf32, #tpu.memory_space<vmem>>) attributes {dimension_semantics = [#tpu.dimension_semantics<parallel>], iteration_bounds = array<i64: 2>, scalar_prefetch = 0 : i64, scratch_operands = 2 : i64, tpu.core_type = #tpu.core_type<tc>, window_params = [{transform_indices = @transform_0, window_bounds = array<i64: 1, 8, 256>}, {pipeline_mode = #tpu.pipeline_mode<synchronous>, transform_indices = @transform_1, window_bounds = array<i64: 9, 256>}, {pipeline_mode = #tpu.pipeline_mode<synchronous>, transform_indices = @transform_2, window_bounds = array<i64: 32, 72>}, {pipeline_mode = #tpu.pipeline_mode<synchronous>, transform_indices = @transform_3, window_bounds = array<i64: 32, 1>}, {pipeline_mode = #tpu.pipeline_mode<synchronous>, transform_indices = @transform_4, window_bounds = array<i64: 16, 144>}, {pipeline_mode = #tpu.pipeline_mode<synchronous>, transform_indices = @transform_5, window_bounds = array<i64: 16, 1>}, {transform_indices = @transform_6, window_bounds = array<i64: 1, 16, 256>}]} {
    %c0 = arith.constant 0 : index
    %c0_0 = arith.constant 0 : index
    %0 = vector.load %arg3[%c0, %c0_0] : memref<32x72xf32, #tpu.memory_space<vmem>>, vector<32x72xf32>
    %c0_1 = arith.constant 0 : index
    %c0_2 = arith.constant 0 : index
    %1 = vector.load %arg5[%c0_1, %c0_2] : memref<16x144xf32, #tpu.memory_space<vmem>>, vector<16x144xf32>
    %c0_3 = arith.constant 0 : index
    %c0_4 = arith.constant 0 : index
    %2 = vector.load %arg4[%c0_3, %c0_4] : memref<32x1xf32, #tpu.memory_space<vmem>>, vector<32x1xf32>
    %c0_5 = arith.constant 0 : index
    %c0_6 = arith.constant 0 : index
    %3 = vector.load %arg6[%c0_5, %c0_6] : memref<16x1xf32, #tpu.memory_space<vmem>>, vector<16x1xf32>
    %c0_7 = arith.constant 0 : index
    %c0_8 = arith.constant 0 : index
    %c0_9 = arith.constant 0 : index
    %4 = vector.load %arg1[%c0_7, %c0_8, %c0_9] : memref<1x8x256xf32, #tpu.memory_space<vmem>>, vector<1x8x256xf32>
    %5 = vector.shape_cast %4 : vector<1x8x256xf32> to vector<8x256xf32>
    %c17_i32 = arith.constant 17 : i32
    %6 = tpu.dynamic_rotate %5 by %c17_i32 dim 1 : vector<8x256xf32>, i32 -> vector<8x256xf32>
    %c0_10 = arith.constant 0 : index
    %c0_11 = arith.constant 0 : index
    %7 = vector.load %arg2[%c0_10, %c0_11] : memref<9x256xf32, #tpu.memory_space<vmem>>, vector<1x256xf32>
    %8 = vector.broadcast %7 : vector<1x256xf32> to vector<8x256xf32>
    %9 = arith.mulf %6, %8 : vector<8x256xf32>
    %c0_12 = arith.constant 0 : index
    %c0_13 = arith.constant 0 : index
    %10 = vector.load %arg8[%c0_12, %c0_13] : memref<72x256xf32, #tpu.memory_space<vmem>>, vector<8x256xf32>
    tpu.vector_store %arg8[%c0_12, %c0_13], %9 {strides = array<i32>} : memref<72x256xf32, #tpu.memory_space<vmem>>, vector<8x256xf32>,
    %c16_i32 = arith.constant 16 : i32
    %11 = tpu.dynamic_rotate %5 by %c16_i32 dim 1 : vector<8x256xf32>, i32 -> vector<8x256xf32>
    %c1 = arith.constant 1 : index
    %c0_14 = arith.constant 0 : index
    %12 = vector.load %arg2[%c1, %c0_14] : memref<9x256xf32, #tpu.memory_space<vmem>>, vector<1x256xf32>
    %13 = vector.broadcast %12 : vector<1x256xf32> to vector<8x256xf32>
    %14 = arith.mulf %11, %13 : vector<8x256xf32>
    %c8 = arith.constant 8 : index
    %c0_15 = arith.constant 0 : index
    %15 = vector.load %arg8[%c8, %c0_15] : memref<72x256xf32, #tpu.memory_space<vmem>>, vector<8x256xf32>
    tpu.vector_store %arg8[%c8, %c0_15], %14 {strides = array<i32>} : memref<72x256xf32, #tpu.memory_space<vmem>>, vector<8x256xf32>,
    %c15_i32 = arith.constant 15 : i32
    %16 = tpu.dynamic_rotate %5 by %c15_i32 dim 1 : vector<8x256xf32>, i32 -> vector<8x256xf32>
    %c2 = arith.constant 2 : index
    %c0_16 = arith.constant 0 : index
    %17 = vector.load %arg2[%c2, %c0_16] : memref<9x256xf32, #tpu.memory_space<vmem>>, vector<1x256xf32>
    %18 = vector.broadcast %17 : vector<1x256xf32> to vector<8x256xf32>
    %19 = arith.mulf %16, %18 : vector<8x256xf32>
    %c16 = arith.constant 16 : index
    %c0_17 = arith.constant 0 : index
    %20 = vector.load %arg8[%c16, %c0_17] : memref<72x256xf32, #tpu.memory_space<vmem>>, vector<8x256xf32>
    tpu.vector_store %arg8[%c16, %c0_17], %19 {strides = array<i32>} : memref<72x256xf32, #tpu.memory_space<vmem>>, vector<8x256xf32>,
    %c1_i32 = arith.constant 1 : i32
    %21 = tpu.dynamic_rotate %5 by %c1_i32 dim 1 : vector<8x256xf32>, i32 -> vector<8x256xf32>
    %c3 = arith.constant 3 : index
    %c0_18 = arith.constant 0 : index
    %22 = vector.load %arg2[%c3, %c0_18] : memref<9x256xf32, #tpu.memory_space<vmem>>, vector<1x256xf32>
    %23 = vector.broadcast %22 : vector<1x256xf32> to vector<8x256xf32>
    %24 = arith.mulf %21, %23 : vector<8x256xf32>
    %c24 = arith.constant 24 : index
    %c0_19 = arith.constant 0 : index
    %25 = vector.load %arg8[%c24, %c0_19] : memref<72x256xf32, #tpu.memory_space<vmem>>, vector<8x256xf32>
    tpu.vector_store %arg8[%c24, %c0_19], %24 {strides = array<i32>} : memref<72x256xf32, #tpu.memory_space<vmem>>, vector<8x256xf32>,
    %c32 = arith.constant 32 : index
    %c0_20 = arith.constant 0 : index
    %26 = vector.load %arg8[%c32, %c0_20] : memref<72x256xf32, #tpu.memory_space<vmem>>, vector<8x256xf32>
    tpu.vector_store %arg8[%c32, %c0_20], %5 {strides = array<i32>} : memref<72x256xf32, #tpu.memory_space<vmem>>, vector<8x256xf32>,
    %c255_i32 = arith.constant 255 : i32
    %27 = tpu.dynamic_rotate %5 by %c255_i32 dim 1 : vector<8x256xf32>, i32 -> vector<8x256xf32>
    %c5 = arith.constant 5 : index
    %c0_21 = arith.constant 0 : index
    %28 = vector.load %arg2[%c5, %c0_21] : memref<9x256xf32, #tpu.memory_space<vmem>>, vector<1x256xf32>
    %29 = vector.broadcast %28 : vector<1x256xf32> to vector<8x256xf32>
    %30 = arith.mulf %27, %29 : vector<8x256xf32>
    %c40 = arith.constant 40 : index
    %c0_22 = arith.constant 0 : index
    %31 = vector.load %arg8[%c40, %c0_22] : memref<72x256xf32, #tpu.memory_space<vmem>>, vector<8x256xf32>
    tpu.vector_store %arg8[%c40, %c0_22], %30 {strides = array<i32>} : memref<72x256xf32, #tpu.memory_space<vmem>>, vector<8x256xf32>,
    %c241_i32 = arith.constant 241 : i32
    %32 = tpu.dynamic_rotate %5 by %c241_i32 dim 1 : vector<8x256xf32>, i32 -> vector<8x256xf32>
    %c6 = arith.constant 6 : index
    %c0_23 = arith.constant 0 : index
    %33 = vector.load %arg2[%c6, %c0_23] : memref<9x256xf32, #tpu.memory_space<vmem>>, vector<1x256xf32>
    %34 = vector.broadcast %33 : vector<1x256xf32> to vector<8x256xf32>
    %35 = arith.mulf %32, %34 : vector<8x256xf32>
    %c48 = arith.constant 48 : index
    %c0_24 = arith.constant 0 : index
    %36 = vector.load %arg8[%c48, %c0_24] : memref<72x256xf32, #tpu.memory_space<vmem>>, vector<8x256xf32>
    tpu.vector_store %arg8[%c48, %c0_24], %35 {strides = array<i32>} : memref<72x256xf32, #tpu.memory_space<vmem>>, vector<8x256xf32>,
    %c240_i32 = arith.constant 240 : i32
    %37 = tpu.dynamic_rotate %5 by %c240_i32 dim 1 : vector<8x256xf32>, i32 -> vector<8x256xf32>
    %c7 = arith.constant 7 : index
    %c0_25 = arith.constant 0 : index
    %38 = vector.load %arg2[%c7, %c0_25] : memref<9x256xf32, #tpu.memory_space<vmem>>, vector<1x256xf32>
    %39 = vector.broadcast %38 : vector<1x256xf32> to vector<8x256xf32>
    %40 = arith.mulf %37, %39 : vector<8x256xf32>
    %c56 = arith.constant 56 : index
    %c0_26 = arith.constant 0 : index
    %41 = vector.load %arg8[%c56, %c0_26] : memref<72x256xf32, #tpu.memory_space<vmem>>, vector<8x256xf32>
    tpu.vector_store %arg8[%c56, %c0_26], %40 {strides = array<i32>} : memref<72x256xf32, #tpu.memory_space<vmem>>, vector<8x256xf32>,
    %c239_i32 = arith.constant 239 : i32
    %42 = tpu.dynamic_rotate %5 by %c239_i32 dim 1 : vector<8x256xf32>, i32 -> vector<8x256xf32>
    %c8_27 = arith.constant 8 : index
    %c0_28 = arith.constant 0 : index
    %43 = vector.load %arg2[%c8_27, %c0_28] : memref<9x256xf32, #tpu.memory_space<vmem>>, vector<1x256xf32>
    %44 = vector.broadcast %43 : vector<1x256xf32> to vector<8x256xf32>
    %45 = arith.mulf %42, %44 : vector<8x256xf32>
    %c64 = arith.constant 64 : index
    %c0_29 = arith.constant 0 : index
    %46 = vector.load %arg8[%c64, %c0_29] : memref<72x256xf32, #tpu.memory_space<vmem>>, vector<8x256xf32>
    tpu.vector_store %arg8[%c64, %c0_29], %45 {strides = array<i32>} : memref<72x256xf32, #tpu.memory_space<vmem>>, vector<8x256xf32>,
    %c0_30 = arith.constant 0 : index
    %c0_31 = arith.constant 0 : index
    %47 = vector.load %arg8[%c0_30, %c0_31] : memref<72x256xf32, #tpu.memory_space<vmem>>, vector<72x256xf32>
    %cst = arith.constant dense<0.000000e+00> : vector<32x256xf32>
    %48 = tpu.matmul %0, %47, %cst {dimension_numbers = #tpu.dot_dimension_numbers<[1], [0], [0], [1], [0, 0, 1, 1], [], []>} : vector<32x72xf32>, vector<72x256xf32>, vector<32x256xf32> -> vector<32x256xf32>
    %49 = vector.broadcast %2 : vector<32x1xf32> to vector<32x256xf32>
    %50 = arith.addf %48, %49 : vector<32x256xf32>
    %51 = vector.extract_strided_slice %50 {offsets = [0, 0], sizes = [16, 256], strides = [1, 1]} : vector<32x256xf32> to vector<16x256xf32>
    %cst_32 = arith.constant 0.000000e+00 : f32
    %52 = vector.broadcast %cst_32 : f32 to vector<16x256xf32>
    %53 = arith.maximumf %51, %52 : vector<16x256xf32>
    %54 = vector.extract_strided_slice %50 {offsets = [16, 0], sizes = [16, 256], strides = [1, 1]} : vector<32x256xf32> to vector<16x256xf32>
    %c17_i32_33 = arith.constant 17 : i32
    %55 = tpu.dynamic_rotate %53 by %c17_i32_33 dim 1 : vector<16x256xf32>, i32 -> vector<16x256xf32>
    %c0_34 = arith.constant 0 : index
    %c0_35 = arith.constant 0 : index
    %56 = vector.load %arg2[%c0_34, %c0_35] : memref<9x256xf32, #tpu.memory_space<vmem>>, vector<1x256xf32>
    %57 = vector.broadcast %56 : vector<1x256xf32> to vector<16x256xf32>
    %58 = arith.mulf %55, %57 : vector<16x256xf32>
    %c0_36 = arith.constant 0 : index
    %c0_37 = arith.constant 0 : index
    %59 = vector.load %arg9[%c0_36, %c0_37] : memref<144x256xf32, #tpu.memory_space<vmem>>, vector<16x256xf32>
    tpu.vector_store %arg9[%c0_36, %c0_37], %58 {strides = array<i32>} : memref<144x256xf32, #tpu.memory_space<vmem>>, vector<16x256xf32>,
    %c16_i32_38 = arith.constant 16 : i32
    %60 = tpu.dynamic_rotate %53 by %c16_i32_38 dim 1 : vector<16x256xf32>, i32 -> vector<16x256xf32>
    %c1_39 = arith.constant 1 : index
    %c0_40 = arith.constant 0 : index
    %61 = vector.load %arg2[%c1_39, %c0_40] : memref<9x256xf32, #tpu.memory_space<vmem>>, vector<1x256xf32>
    %62 = vector.broadcast %61 : vector<1x256xf32> to vector<16x256xf32>
    %63 = arith.mulf %60, %62 : vector<16x256xf32>
    %c16_41 = arith.constant 16 : index
    %c0_42 = arith.constant 0 : index
    %64 = vector.load %arg9[%c16_41, %c0_42] : memref<144x256xf32, #tpu.memory_space<vmem>>, vector<16x256xf32>
    tpu.vector_store %arg9[%c16_41, %c0_42], %63 {strides = array<i32>} : memref<144x256xf32, #tpu.memory_space<vmem>>, vector<16x256xf32>,
    %c15_i32_43 = arith.constant 15 : i32
    %65 = tpu.dynamic_rotate %53 by %c15_i32_43 dim 1 : vector<16x256xf32>, i32 -> vector<16x256xf32>
    %c2_44 = arith.constant 2 : index
    %c0_45 = arith.constant 0 : index
    %66 = vector.load %arg2[%c2_44, %c0_45] : memref<9x256xf32, #tpu.memory_space<vmem>>, vector<1x256xf32>
    %67 = vector.broadcast %66 : vector<1x256xf32> to vector<16x256xf32>
    %68 = arith.mulf %65, %67 : vector<16x256xf32>
    %c32_46 = arith.constant 32 : index
    %c0_47 = arith.constant 0 : index
    %69 = vector.load %arg9[%c32_46, %c0_47] : memref<144x256xf32, #tpu.memory_space<vmem>>, vector<16x256xf32>
    tpu.vector_store %arg9[%c32_46, %c0_47], %68 {strides = array<i32>} : memref<144x256xf32, #tpu.memory_space<vmem>>, vector<16x256xf32>,
    %c1_i32_48 = arith.constant 1 : i32
    %70 = tpu.dynamic_rotate %53 by %c1_i32_48 dim 1 : vector<16x256xf32>, i32 -> vector<16x256xf32>
    %c3_49 = arith.constant 3 : index
    %c0_50 = arith.constant 0 : index
    %71 = vector.load %arg2[%c3_49, %c0_50] : memref<9x256xf32, #tpu.memory_space<vmem>>, vector<1x256xf32>
    %72 = vector.broadcast %71 : vector<1x256xf32> to vector<16x256xf32>
    %73 = arith.mulf %70, %72 : vector<16x256xf32>
    %c48_51 = arith.constant 48 : index
    %c0_52 = arith.constant 0 : index
    %74 = vector.load %arg9[%c48_51, %c0_52] : memref<144x256xf32, #tpu.memory_space<vmem>>, vector<16x256xf32>
    tpu.vector_store %arg9[%c48_51, %c0_52], %73 {strides = array<i32>} : memref<144x256xf32, #tpu.memory_space<vmem>>, vector<16x256xf32>,
    %c64_53 = arith.constant 64 : index
    %c0_54 = arith.constant 0 : index
    %75 = vector.load %arg9[%c64_53, %c0_54] : memref<144x256xf32, #tpu.memory_space<vmem>>, vector<16x256xf32>
    tpu.vector_store %arg9[%c64_53, %c0_54], %53 {strides = array<i32>} : memref<144x256xf32, #tpu.memory_space<vmem>>, vector<16x256xf32>,
    %c255_i32_55 = arith.constant 255 : i32
    %76 = tpu.dynamic_rotate %53 by %c255_i32_55 dim 1 : vector<16x256xf32>, i32 -> vector<16x256xf32>
    %c5_56 = arith.constant 5 : index
    %c0_57 = arith.constant 0 : index
    %77 = vector.load %arg2[%c5_56, %c0_57] : memref<9x256xf32, #tpu.memory_space<vmem>>, vector<1x256xf32>
    %78 = vector.broadcast %77 : vector<1x256xf32> to vector<16x256xf32>
    %79 = arith.mulf %76, %78 : vector<16x256xf32>
    %c80 = arith.constant 80 : index
    %c0_58 = arith.constant 0 : index
    %80 = vector.load %arg9[%c80, %c0_58] : memref<144x256xf32, #tpu.memory_space<vmem>>, vector<16x256xf32>
    tpu.vector_store %arg9[%c80, %c0_58], %79 {strides = array<i32>} : memref<144x256xf32, #tpu.memory_space<vmem>>, vector<16x256xf32>,
    %c241_i32_59 = arith.constant 241 : i32
    %81 = tpu.dynamic_rotate %53 by %c241_i32_59 dim 1 : vector<16x256xf32>, i32 -> vector<16x256xf32>
    %c6_60 = arith.constant 6 : index
    %c0_61 = arith.constant 0 : index
    %82 = vector.load %arg2[%c6_60, %c0_61] : memref<9x256xf32, #tpu.memory_space<vmem>>, vector<1x256xf32>
    %83 = vector.broadcast %82 : vector<1x256xf32> to vector<16x256xf32>
    %84 = arith.mulf %81, %83 : vector<16x256xf32>
    %c96 = arith.constant 96 : index
    %c0_62 = arith.constant 0 : index
    %85 = vector.load %arg9[%c96, %c0_62] : memref<144x256xf32, #tpu.memory_space<vmem>>, vector<16x256xf32>
    tpu.vector_store %arg9[%c96, %c0_62], %84 {strides = array<i32>} : memref<144x256xf32, #tpu.memory_space<vmem>>, vector<16x256xf32>,
    %c240_i32_63 = arith.constant 240 : i32
    %86 = tpu.dynamic_rotate %53 by %c240_i32_63 dim 1 : vector<16x256xf32>, i32 -> vector<16x256xf32>
    %c7_64 = arith.constant 7 : index
    %c0_65 = arith.constant 0 : index
    %87 = vector.load %arg2[%c7_64, %c0_65] : memref<9x256xf32, #tpu.memory_space<vmem>>, vector<1x256xf32>
    %88 = vector.broadcast %87 : vector<1x256xf32> to vector<16x256xf32>
    %89 = arith.mulf %86, %88 : vector<16x256xf32>
    %c112 = arith.constant 112 : index
    %c0_66 = arith.constant 0 : index
    %90 = vector.load %arg9[%c112, %c0_66] : memref<144x256xf32, #tpu.memory_space<vmem>>, vector<16x256xf32>
    tpu.vector_store %arg9[%c112, %c0_66], %89 {strides = array<i32>} : memref<144x256xf32, #tpu.memory_space<vmem>>, vector<16x256xf32>,
    %c239_i32_67 = arith.constant 239 : i32
    %91 = tpu.dynamic_rotate %53 by %c239_i32_67 dim 1 : vector<16x256xf32>, i32 -> vector<16x256xf32>
    %c8_68 = arith.constant 8 : index
    %c0_69 = arith.constant 0 : index
    %92 = vector.load %arg2[%c8_68, %c0_69] : memref<9x256xf32, #tpu.memory_space<vmem>>, vector<1x256xf32>
    %93 = vector.broadcast %92 : vector<1x256xf32> to vector<16x256xf32>
    %94 = arith.mulf %91, %93 : vector<16x256xf32>
    %c128 = arith.constant 128 : index
    %c0_70 = arith.constant 0 : index
    %95 = vector.load %arg9[%c128, %c0_70] : memref<144x256xf32, #tpu.memory_space<vmem>>, vector<16x256xf32>
    tpu.vector_store %arg9[%c128, %c0_70], %94 {strides = array<i32>} : memref<144x256xf32, #tpu.memory_space<vmem>>, vector<16x256xf32>,
    %c0_71 = arith.constant 0 : index
    %c0_72 = arith.constant 0 : index
    %96 = vector.load %arg9[%c0_71, %c0_72] : memref<144x256xf32, #tpu.memory_space<vmem>>, vector<144x256xf32>
    %cst_73 = arith.constant dense<0.000000e+00> : vector<16x256xf32>
    %97 = tpu.matmul %1, %96, %cst_73 {dimension_numbers = #tpu.dot_dimension_numbers<[1], [0], [0], [1], [0, 0, 1, 1], [], []>} : vector<16x144xf32>, vector<144x256xf32>, vector<16x256xf32> -> vector<16x256xf32>
    %98 = vector.broadcast %3 : vector<16x1xf32> to vector<16x256xf32>
    %99 = arith.addf %97, %98 : vector<16x256xf32>
    %100 = arith.addf %99, %54 : vector<16x256xf32>
    %cst_74 = arith.constant 0.000000e+00 : f32
    %101 = vector.broadcast %cst_74 : f32 to vector<16x256xf32>
    %102 = arith.maximumf %100, %101 : vector<16x256xf32>
    %c0_75 = arith.constant 0 : index
    %c0_76 = arith.constant 0 : index
    %c0_77 = arith.constant 0 : index
    %103 = vector.load %arg7[%c0_75, %c0_76, %c0_77] : memref<1x16x256xf32, #tpu.memory_space<vmem>>, vector<1x16x256xf32>
    %104 = vector.shape_cast %103 : vector<1x16x256xf32> to vector<16x256xf32>
    %105 = vector.shape_cast %102 : vector<16x256xf32> to vector<1x16x256xf32>
    tpu.vector_store %arg7[%c0_75, %c0_76, %c0_77], %105 {strides = array<i32>} : memref<1x16x256xf32, #tpu.memory_space<vmem>>, vector<1x16x256xf32>,
    return
  }
  func.func @transform_0(%arg0: i32) -> (i32, i32, i32) {
    %c0_i32 = arith.constant 0 : i32
    %c0_i32_0 = arith.constant 0 : i32
    %c0_i32_1 = arith.constant 0 : i32
    return %arg0, %c0_i32, %c0_i32_0 : i32, i32, i32
  }
  func.func @transform_1(%arg0: i32) -> (i32, i32) {
    %c0_i32 = arith.constant 0 : i32
    %c0_i32_0 = arith.constant 0 : i32
    %c0_i32_1 = arith.constant 0 : i32
    return %c0_i32, %c0_i32_0 : i32, i32
  }
  func.func @transform_2(%arg0: i32) -> (i32, i32) {
    %c0_i32 = arith.constant 0 : i32
    %c0_i32_0 = arith.constant 0 : i32
    %c0_i32_1 = arith.constant 0 : i32
    return %c0_i32, %c0_i32_0 : i32, i32
  }
  func.func @transform_3(%arg0: i32) -> (i32, i32) {
    %c0_i32 = arith.constant 0 : i32
    %c0_i32_0 = arith.constant 0 : i32
    %c0_i32_1 = arith.constant 0 : i32
    return %c0_i32, %c0_i32_0 : i32, i32
  }
  func.func @transform_4(%arg0: i32) -> (i32, i32) {
    %c0_i32 = arith.constant 0 : i32
    %c0_i32_0 = arith.constant 0 : i32
    %c0_i32_1 = arith.constant 0 : i32
    return %c0_i32, %c0_i32_0 : i32, i32
  }
  func.func @transform_5(%arg0: i32) -> (i32, i32) {
    %c0_i32 = arith.constant 0 : i32
    %c0_i32_0 = arith.constant 0 : i32
    %c0_i32_1 = arith.constant 0 : i32
    return %c0_i32, %c0_i32_0 : i32, i32
  }
  func.func @transform_6(%arg0: i32) -> (i32, i32, i32) {
    %c0_i32 = arith.constant 0 : i32
    %c0_i32_0 = arith.constant 0 : i32
    %c0_i32_1 = arith.constant 0 : i32
    return %arg0, %c0_i32, %c0_i32_0 : i32, i32, i32
  }
}

</mosaic_0001>

<bundles_post_ra>
// kernel: tpu_custom_call.1
= control target key start
LH: loop header
LB: loop body
LE: loop exit
PB: predicated region body
PF: predicated region fallthrough
CT: control target
= control target key end

     0   :  { %11 = vsyncpa [#allocation5], 0  ;;  %s2007_s0 = inlined_call_operand.vmem [shape: f32[2,8,256], index: 0, kind: input, shape index: {}]   ;;  %s2008_s1 = inlined_call_operand.hbm [shape: f32[9,256], index: 1, kind: input, shape index: {}]   ;;  %s2009_s2 = inlined_call_operand.hbm [shape: f32[32,72], index: 2, kind: input, shape index: {}]   ;;  %s2010_s3 = inlined_call_operand.vmem [shape: f32[32,1], index: 3, kind: input, shape index: {}]   ;;  %s2011_s4 = inlined_call_operand.vmem [shape: f32[16,144], index: 4, kind: input, shape index: {}]   ;;  %s2012_s5 = inlined_call_operand.vmem [shape: f32[16,1], index: 5, kind: input, shape index: {}]   ;;  %s2013_s6 = inlined_call_operand.hbm [shape: f32[2,16,256], index: 6, kind: output, shape index: {}]  }
   0x1   :  { %12 = vsyncpa [#allocation8], 0 }
   0x2   :  { %13 = vsyncpa [#allocation6], 0 }
   0x3   :  { %15 = vsyncpa [#allocation6 + $0x1], 0  ;;  %s1481_s21 = smov 0   ;;  %s1483_s22 = smov 0  }
   0x4   :  { %s1485_s23 = smov 0   ;;  %s1487_s24 = smov 0  }
   0x5 LB: > { %s1502_s25 = sadd.s32 4294967295, %s1426_s24   ;;  %s1135_s26 = sadd.s32 4294967294, %s1426_s24   ;;  %s1426_s24 = sphi %s1487_s24, %s2031_s24   ;;  %s1422_s23 = sphi %s1485_s23, %s2030_s23   ;;  %s1418_s22 = sphi %s1483_s22, %s2029_s22   ;;  %s1414_s21 = sphi %s1481_s21, %s2028_s21  }
   0x6   : > { %s1506_s27 = sadd.s32 1, %s1426_s24   ;;  %s159_s28 = sadd.s32 1, %s1422_s23 }
   0x7   : > { %s156_s29 = ssub.s32 %s1426_s24, %s1506_s27  ;;  %p169_p0 = scmp.ne.s32.totalorder %s1422_s23, %s1418_s22 }
   0x8   : > { %p157_p1 = scmp.eq.s32.totalorder %s156_s29, 0  ;;  %p170_p2 = scmp.eq.s32.totalorder %s1502_s25, 1 }
   0x9   : > { %p175_p3 = scmp.ne.s32.totalorder %s1418_s22, %s1414_s21  ;;  %p176_p4 = scmp.eq.s32.totalorder %s1135_s26, 1 }
   0xa   : > { %s1517_s30 = scalar_select %p157_p1, %s1422_s23, %s159_s28  }
   0xb   : > { %p1519_p5 = por %p170_p2, %p169_p0  ;;  %p1523_p6 = por %p176_p4, %p175_p3 }
   0xc   : > { %p1136_p7 = scmp.ge.s32.totalorder %s1426_s24, 1  ;;  %p183_p8 = scmp.lt.s32.totalorder %s1426_s24, 3 }
   0xd   : > { %s2017_s7 = scalar_select %p1519_p5, 1, 0 }
   0xe   : > { %s2018_s8 = scalar_select %p1523_p6, 1, 0 }
   0xf   : > { %p2014_p9 = scmp.eq.s32.totalorder %s1502_s25, 0  ;;  %p1530_p10 = pnand %p1136_p7, %p183_p8 }
  0x10   : > { %s1428_s10 = smov [#allocation4]   ;;  %s1429_s13 = smov [#allocation7]  }
  0x11   : > { %s2019_s9 = scalar_select %p1530_p10, 1, 0 }
  0x12   : > { %s195_s11 = sshll.u32 %s1428_s10, 4  ;;  %p1233_p11 = pneg %p1530_p10  ;;  %s196_s11 = int_to_ptr.vmem [resolvable:$true] %s195_s11 }
  0x13   : > { %s208_s14 = sshll.u32 %s1429_s13, 4  ;;  %s1300_s17 = scalar_lea.hbm %s2008_s1, 512  ;;  %s1542_s14 = int_to_ptr.vmem [resolvable:$true] %s208_s14 }
  0x14   : > { %p1538_p12 = pnand %p2014_p9, %p1233_p11  ;;  %p1301_p13 = scmp.ne.s32.totalorder %s2008_s1, %s1300_s17 }
  0x15   : > { %p1307_p3 = scmp.lt.u32.totalorder %s1300_s17, %s2008_s1 }
  0x16   : > { %p1302_p0 = pneg %p1538_p12 }
  0x18   : > { %p1303_p1 = pnand %p1302_p0, %p1301_p13 }
  0x1a   : > { %p1304_p2 = pneg %p1303_p1 }
  0x1c   : > { %p1309_p4 = pnand %p1307_p3, %p1304_p2 }
  0x1e   : > { %1312 = shalt.err (!%p1309_p4)
}
  0x1f   : > { %s1313_s28 = scalar_lea.vmem %s196_s11, 512  ;;  %p1321_p9 = scmp.lt.s32.totalorder %s196_s11, %s196_s11 }
  0x20   : > { %p1314_p7 = scmp.ne.s32.totalorder %s196_s11, %s1313_s28  ;;  %p1322_p6 = scmp.lt.s32.totalorder %s1313_s28, %s1313_s28 }
  0x22   : > { %p1316_p8 = pnand %p1314_p7, %p1302_p0  ;;  %p1323_p5 = por %p1322_p6, %p1321_p9 }
  0x24   : > { %p1317_p11 = pneg %p1316_p8 }
  0x26   : > { %p1324_p10 = pnand %p1323_p5, %p1317_p11 }
  0x28   : > { %1327 = shalt.err (!%p1324_p10)
}
  0x29   : > { %s1430_s29 = smov 256   ;;  %s1431_s10 = smov 16  }
  0x2a   : > { %1236 = dma.hbm_to_vmem [thread:$0]  (!%p1538_p12), %s2008_s1, 512, %s196_s11, [#allocation5], %s1430_s29, %s1430_s29, %s1431_s10  }
  0x2b   : > { %s1328_s18 = scalar_lea.hbm %s2009_s2, 512 }
  0x2c   : > { %p1329_p13 = scmp.ne.s32.totalorder %s2009_s2, %s1328_s18  ;;  %p1335_p9 = scmp.lt.u32.totalorder %s1328_s18, %s2009_s2 }
  0x2e   : > { %p1331_p5 = pnand %p1329_p13, %p1302_p0 }
  0x30   : > { %p1332_p6 = pneg %p1331_p5 }
  0x32   : > { %p1337_p10 = pnand %p1335_p9, %p1332_p6 }
  0x34   : > { %1340 = shalt.err (!%p1337_p10)
}
  0x35   : > { %s1341_s11 = scalar_lea.vmem %s1542_s14, 512  ;;  %p1349_p4 = scmp.lt.s32.totalorder %s1542_s14, %s1542_s14 }
  0x36   : > { %p1342_p1 = scmp.ne.s32.totalorder %s1542_s14, %s1341_s11  ;;  %p1350_p7 = scmp.lt.s32.totalorder %s1341_s11, %s1341_s11 }
  0x38   : > { %p1344_p2 = pnand %p1342_p1, %p1302_p0  ;;  %p1351_p8 = por %p1350_p7, %p1349_p4 }
  0x3a   : > { %p1345_p3 = pneg %p1344_p2 }
  0x3c   : > { %p1352_p11 = pnand %p1351_p8, %p1345_p3 }
  0x3e   : > { %1355 = shalt.err (!%p1352_p11)
}
  0x3f   : > { %s1432_s29 = smov 128   ;;  %s1433_s10 = smov 8  }
  0x40   : > { %1239 = dma.hbm_to_vmem [thread:$0]  (!%p1538_p12), %s2009_s2, 512, %s1542_s14, [#allocation8], %s1432_s29, %s1432_s29, %s1433_s10  }
  0x41   : > { %p2021_p13 = scmp.ne.s32.totalorder %s2019_s9, 0 }
  0x42   : > { %p2022_p0 = scmp.eq.s32.totalorder (!%p2021_p13), %s1502_s25, 0 }
  0x43   : > { %241 = sbr.rel (%p2021_p13) target bundleno = 875 (0x36b), region = 44 }
  0x4a   : > { %1401 = dma.done.wait (%p2022_p0), [#allocation5], 512   ;;  %p2023_p5 = pmov %p2022_p0 }
  0x4b   : > { %p2024_p6 = pmov %p2022_p0 }
  0x4c   : > { %1403 = vsyncadd (%p2023_p5), [#allocation5], 4294966784 }
  0x4d   : > { %1405 = dma.done.wait (%p2024_p6), [#allocation8], 512   ;;  %p2025_p9 = pmov %p2022_p0 }
  0x4e   : > { %p275_p10 = scmp.lt.s32.totalorder %s1502_s25, 1  ;;  %s1434_s18 = smov 16   ;;  %v1440_v2 = vmov 0.0   ;;  %v1442_v3 = vmov 0   ;;  %v288_v4 = vld [vmem:[%s2010_s3] sm:$0xff]  ;;  %v289_v5 = vld [vmem:[%s2010_s3 + $0x8] sm:$0xff]  ;;  %v300_v6 = vlaneseq }
  0x4f   : > { %1407 = vsyncadd (%p2025_p9), [#allocation8], 4294966784  ;;  %s1435_s19 = smov 17   ;;  %s1436_s20 = smov 15   ;;  %606 = vmatprep.mubr.f32.mxu1 %v1440_v2  ;;  %1298 = vset.pattern.permute.xlu0 %v1442_v3  ;;  %vm529_vm8 = vcmask 588800   ;;  %vm941_vm9 = vcmask 130048  }
  0x50   : > { %s276_s12 = scalar_select %p275_p10, %s1502_s25, 1  ;;  %1299 = vset.pattern.permute.xlu1 %v1442_v3  ;;  %v308_v7 = vshrl.u32 %v300_v6, 7  ;;  %v1649_v8 = vand.u32 127, %v300_v6  ;;  %v329_v11 = vld [vmem:[#allocation4 + $0x1] ss:$8 sm:$0x3] }
  0x51   : > { %s1437_s26 = smov 1   ;;  %s1438_s28 = smov 127   ;;  %v305_v12 = vld [vmem:[#allocation4] ss:$8 sm:$0x3] }
  0x52   : > { %s1157_s14 = sshll.u32 %s276_s12, 4  ;;  %s1439_s11 = smov 113   ;;  %v1651_v9 = vsub.s32 0, %v308_v7  ;;  %v1653_v10 = vsub.s32 1, %v308_v7  ;;  %vm325_vm0 = vcmp.lt.s32.totalorder %v1649_v8, 16  ;;  %vm302_vm1 = vcmp.lt.s32.totalorder %v1649_v8, 17 }
  0x53   : > { %s279_s17 = scalar_lea.vmem %s2007_s0, %s1157_s14  ;;  %s1441_s29 = smov 112   ;;  %v353_v29 = vld [vmem:[#allocation4 + $0x2] ss:$8 sm:$0x3]  ;;  %vm349_vm2 = vcmp.lt.s32.totalorder %v1649_v8, 15  ;;  %vm373_vm3 = vcmp.lt.s32.totalorder %v1649_v8, 1 }
  0x54   : > { %v1606_v0 = vld [vmem:[%s279_s17] sm:$0xff]  ;;  %v1612_v1 = vld [vmem:[%s279_s17 + $0x8] sm:$0xff]  ;;  %s1443_s10 = smov 111   ;;  %v334_v15 = vrot.slane %v329_v11, %v1651_v9  ;;  %v310_v16 = vrot.slane %v305_v12, %v1651_v9  ;;  %v314_v17 = vrot.slane %v305_v12, %v1653_v10  ;;  %v338_v18 = vrot.slane %v329_v11, %v1653_v10  ;;  %v475_v12 = vld [vmem:[#allocation4 + $0x10] ss:$8 sm:$0x3] }
  0x55   : > { %321 = vrot.lane.b32.xlu1 %v1606_v0, %s1434_s18  ;;  %296 = vrot.lane.b32.xlu0 %v1606_v0, %s1435_s19  ;;  %v377_v30 = vld [vmem:[#allocation4 + $0x3] ss:$8 sm:$0x3]  ;;  %v358_v35 = vrot.slane %v353_v29, %v1651_v9  ;;  %v362_v36 = vrot.slane %v353_v29, %v1653_v10  ;;  %v403_v39 = vld [vmem:[#allocation4 + $0x5] ss:$8 sm:$0x3] }
  0x56   : > { %v382_v37 = vrot.slane %v377_v30, %v1651_v9  ;;  %v386_v38 = vrot.slane %v377_v30, %v1653_v10  ;;  %vm399_vm4 = vcmp.lt.s32.totalorder %v1649_v8, 127  ;;  %v408_v46 = vrot.slane %v403_v39, %v1651_v9  ;;  %v427_v60 = vld [vmem:[#allocation4 + $0x6] ss:$8 sm:$0x3]  ;;  %s272_s17 = sand.u32 1, %s1418_s22   ;;  %p2026_p1 = scmp.ne.s32.totalorder %s2017_s7, 0 }
  0x57   : > { %v412_v47 = vrot.slane %v403_v39, %v1653_v10  ;;  %v451_v61 = vld [vmem:[#allocation4 + $0x7] ss:$8 sm:$0x3]  ;;  %vm423_vm5 = vcmp.lt.s32.totalorder %v1649_v8, 113  ;;  %v436_v6 = vrot.slane %v427_v60, %v1653_v10  ;;  %vm447_vm6 = vcmp.lt.s32.totalorder %v1649_v8, 112  ;;  %s1444_s15 = smov [#allocation9]  }
  0x58   : > { %v456_v7 = vrot.slane %v451_v61, %v1651_v9  ;;  %v460_v11 = vrot.slane %v451_v61, %v1653_v10  ;;  %vm471_vm7 = vcmp.lt.s32.totalorder %v1649_v8, 111  ;;  %v287_v8 = vld [vmem:[%s2011_s4 + $0x18] sm:$0xff]  ;;  %s1360_s12 = sshll.u32 %s1444_s15, 4  ;;  %s1361_s12 = int_to_ptr.vmem [resolvable:$false] %s1360_s12 }
  0x59   : > { %323 = vrot.lane.b32.xlu1 %v1612_v1, %s1434_s18  ;;  %298 = vrot.lane.b32.xlu0 %v1612_v1, %s1435_s19  ;;  %s1362_s14 = scalar_lea.vmem %s1361_s12, 1024 }
  0x5d   : > { %347 = vrot.lane.b32.xlu1 %v1612_v1, %s1436_s20  ;;  %345 = vrot.lane.b32.xlu0 %v1606_v0, %s1436_s20 }
  0x61   : > { %371 = vrot.lane.b32.xlu1 %v1612_v1, %s1437_s26  ;;  %369 = vrot.lane.b32.xlu0 %v1606_v0, %s1437_s26 }
  0x65   : > { %397 = vrot.lane.b32.xlu1 %v1612_v1, %s1438_s28  ;;  %395 = vrot.lane.b32.xlu0 %v1606_v0, %s1438_s28 }
  0x69   : > { %421 = vrot.lane.b32.xlu1 %v1612_v1, %s1439_s11  ;;  %419 = vrot.lane.b32.xlu0 %v1606_v0, %s1439_s11 }
  0x6d   : > { %445 = vrot.lane.b32.xlu1 %v1612_v1, %s1441_s29  ;;  %443 = vrot.lane.b32.xlu0 %v1606_v0, %s1441_s29 }
  0x71   : > { %469 = vrot.lane.b32.xlu1 %v1612_v1, %s1443_s10  ;;  %467 = vrot.lane.b32.xlu0 %v1606_v0, %s1443_s10 }
  0x75   : > { %511 = vperm.xlu0 %1298, %v288_v4   ;;  %516 = vperm.xlu1 %1299, %v289_v5   ;;  %v432_v5 = vrot.slane %v427_v60, %v1651_v9 }
  0xc7   : > { %v322_v13 = vpop.permute.xlu1 %321  ;;  %v297_v14 = vpop.permute.xlu0 %296 }
  0xcb   : > { %v324_v19 = vpop.permute.xlu1 %323  ;;  %v299_v20 = vpop.permute.xlu0 %298 }
  0xcc   : > { %v326_v21 = vsel %vm325_vm0, %v322_v13, %v324_v19  ;;  %v327_v22 = vsel %vm325_vm0, %v324_v19, %v322_v13  ;;  %v303_v23 = vsel %vm302_vm1, %v297_v14, %v299_v20  ;;  %v304_v24 = vsel %vm302_vm1, %v299_v20, %v297_v14 }
  0xcd   : > { %v341_v25 = vmul.f32 %v334_v15, %v327_v22  ;;  %v317_v26 = vmul.f32 %v310_v16, %v304_v24  ;;  %v318_v27 = vmul.f32 %v314_v17, %v303_v23  ;;  %v342_v28 = vmul.f32 %v338_v18, %v326_v21 }
  0xce   : > { %v484_v17 = vrot.slane %v475_v12, %v1653_v10  ;;  %v480_v22 = vrot.slane %v475_v12, %v1651_v9 }
  0xcf   : > { %v348_v31 = vpop.permute.xlu1 %347  ;;  %v346_v32 = vpop.permute.xlu0 %345  ;;  %v1159_v33 = vpack.c.bf16 %v342_v28, %v318_v27  ;;  %v1161_v34 = vpack.c.bf16 %v341_v25, %v317_v26 }
  0xd0   : > { %v350_v40 = vsel %vm349_vm2, %v346_v32, %v348_v31  ;;  %v351_v41 = vsel %vm349_vm2, %v348_v31, %v346_v32  ;;  %v280_v31 = vld [vmem:[#allocation7] sm:$0xff]  ;;  %v281_v32 = vld [vmem:[#allocation7 + $0x8] sm:$0xff] }
  0xd1   : > { %1160 = vmatprep.subr.bf16.mxu1 %v1159_v33  ;;  %v365_v48 = vmul.f32 %v358_v35, %v351_v41  ;;  %v366_v49 = vmul.f32 %v362_v36, %v350_v40  ;;  %v282_v33 = vld [vmem:[#allocation7 + $0x10] sm:$0xff] }
  0xd2   : > { %1162 = vmatpush1.bf16.msra.mxu1 %v1161_v34  ;;  %v283_v34 = vld [vmem:[#allocation7 + $0x18] sm:$0xff] }
  0xd3   : > { %v372_v42 = vpop.permute.xlu1 %371  ;;  %v370_v43 = vpop.permute.xlu0 %369 }
  0xd4   : > { %v374_v44 = vsel %vm373_vm3, %v370_v43, %v372_v42  ;;  %v375_v45 = vsel %vm373_vm3, %v372_v42, %v370_v43 }
  0xd5   : > { %v389_v50 = vmul.f32 %v382_v37, %v375_v45  ;;  %v390_v51 = vmul.f32 %v386_v38, %v374_v44 }
  0xd7   : > { %v398_v52 = vpop.permute.xlu1 %397  ;;  %v396_v53 = vpop.permute.xlu0 %395  ;;  %v1163_v54 = vpack.c.bf16 %v390_v51, %v366_v49  ;;  %v1165_v55 = vpack.c.bf16 %v389_v50, %v365_v48  ;;  %v285_v50 = vld [vmem:[%s2011_s4 + $0x8] sm:$0xff] }
  0xd8   : > { %v400_v56 = vsel %vm399_vm4, %v396_v53, %v398_v52  ;;  %v401_v57 = vsel %vm399_vm4, %v398_v52, %v396_v53  ;;  %1150 = vmatprep.mubr.msk.f32.mxu0 %vm941_vm9, %v285_v50  ;;  %v290_v52 = vld [vmem:[%s2010_s3 + $0x10] sm:$0xff]  ;;  %v743_v50 = vld [vmem:[#allocation4 + $0x3] ss:$8 sm:$0x3] }
  0xd9   : > { %v415_v58 = vmul.f32 %v408_v46, %v400_v56  ;;  %v416_v59 = vmul.f32 %v412_v47, %v401_v57  ;;  %1164 = vmatprep.subr.bf16.mxu1 %v1163_v54  ;;  %v292_v56 = vld [vmem:[%s2012_s5] sm:$0xff] }
  0xda   : > { %1166 = vmatpush1.bf16.msra.mxu1 %v1165_v55  ;;  %v291_v55 = vld [vmem:[%s2010_s3 + $0x18] sm:$0xff] }
  0xdb   : > { %v422_v62 = vpop.permute.xlu1 %421  ;;  %v420_v63 = vpop.permute.xlu0 %419  ;;  %v1167_v3 = vpack.c.bf16 %v416_v59, %v1612_v1  ;;  %v1169_v4 = vpack.c.bf16 %v415_v58, %v1606_v0  ;;  %v293_v58 = vld [vmem:[%s2012_s5 + $0x8] sm:$0xff] }
  0xdc   : > { %v424_v13 = vsel %vm423_vm5, %v420_v63, %v422_v62  ;;  %v425_v1 = vsel %vm423_vm5, %v422_v62, %v420_v63 }
  0xdd   : > { %1168 = vmatprep.subr.bf16.mxu1 %v1167_v3  ;;  %v439_v18 = vmul.f32 %v432_v5, %v424_v13  ;;  %v440_v19 = vmul.f32 %v436_v6, %v425_v1  ;;  %v647_v1 = vld [vmem:[#allocation4] ss:$8 sm:$0x3] }
  0xde   : > { %1170 = vmatpush1.bf16.msra.mxu1 %v1169_v4 }
  0xdf   : > { %v446_v0 = vpop.permute.xlu1 %445  ;;  %v444_v14 = vpop.permute.xlu0 %443 }
  0xe0   : > { %v448_v15 = vsel %vm447_vm6, %v444_v14, %v446_v0  ;;  %v449_v16 = vsel %vm447_vm6, %v446_v0, %v444_v14 }
  0xe1   : > { %v463_v20 = vmul.f32 %v456_v7, %v448_v15  ;;  %v464_v21 = vmul.f32 %v460_v11, %v449_v16  ;;  %v652_v15 = vrot.slane %v647_v1, %v1651_v9  ;;  %v679_v16 = vld [vmem:[#allocation4 + $0x1] ss:$8 sm:$0x3] }
  0xe3   : > { %v470_v23 = vpop.permute.xlu1 %469  ;;  %v1171_v24 = vpack.c.bf16 %v464_v21, %v440_v19  ;;  %v468_v25 = vpop.permute.xlu0 %467  ;;  %v1173_v26 = vpack.c.bf16 %v463_v20, %v439_v18 }
  0xe4   : > { %v472_v27 = vsel %vm471_vm7, %v468_v25, %v470_v23  ;;  %v473_v28 = vsel %vm471_vm7, %v470_v23, %v468_v25  ;;  %v688_v25 = vrot.slane %v679_v16, %v1653_v10 }
  0xe5   : > { %1172 = vmatprep.subr.bf16.mxu1 %v1171_v24  ;;  %v488_v29 = vmul.f32 %v484_v17, %v473_v28  ;;  %v487_v30 = vmul.f32 %v480_v22, %v472_v27  ;;  %v656_v17 = vrot.slane %v647_v1, %v1653_v10  ;;  %v684_v24 = vrot.slane %v679_v16, %v1651_v9  ;;  %v711_v28 = vld [vmem:[#allocation4 + $0x2] ss:$8 sm:$0x3] }
  0xe6   : > { %1174 = vmatpush1.bf16.msra.mxu1 %v1173_v26  ;;  %v748_v1 = vrot.slane %v743_v50, %v1651_v9 }
  0xe7   : > { %558 = vmatprep.subr.mxu1 %v488_v29 }
  0xea   : > { %559 = vmatpush1.msra.mxu1 %v487_v30 }
  0xeb   : > { %1146 = vmatmul.mubr.msk.f32.vlgmr.msra.gmra.mrb[0].mxu1 %vm529_vm8, %v280_v31 }
  0xec   : > { %612 = vmatprep.mubr.f32.mxu1 %v1440_v2 }
  0xef   : > { %1147 = vmatmul.mubr.msk.f32.gmra.mrb[2].mxu1 %vm529_vm8, %v281_v32 }
  0xf0   : > { %618 = vmatprep.mubr.f32.mxu1 %v1440_v2 }
  0xf3   : > { %1148 = vmatmul.mubr.msk.f32.gmra.mrb[4].mxu1 %vm529_vm8, %v282_v33 }
  0xf4   : > { %624 = vmatprep.mubr.f32.mxu1 %v1440_v2  ;;  %v512_v35 = vpop.permute.xlu0 %511  ;;  %v517_v39 = vpop.permute.xlu1 %516 }
  0xf7   : > { %1149 = vmatmul.mubr.msk.f32.gmra.mrb[6].mxu1 %vm529_vm8, %v283_v34 }
 0x1be   : > { %v608_v36 = vpop.f32.mrb[0].mxu1 }
 0x1bf   : > { %v609_v37 = vadd.f32 %v608_v36, %v512_v35  ;;  %v610_v38 = vpop.f32.mrb[1].mxu1 }
 0x1c0   : > { %v611_v41 = vadd.f32 %v610_v38, %v512_v35 }
 0x1c1   : > { %v1716_v40 = vmax.f32 %v609_v37, 0.0 }
 0x1c2   : > { %v614_v42 = vpop.f32.mrb[2].mxu1  ;;  %v1722_v2 = vmax.f32 %v611_v41, 0.0  ;;  %v720_v41 = vrot.slane %v711_v28, %v1653_v10 }
 0x1c3   : > { %v615_v43 = vadd.f32 %v614_v42, %v517_v39  ;;  %v616_v44 = vpop.f32.mrb[3].mxu1  ;;  %635 = vrot.lane.b32.xlu1 %v1716_v40, %s1435_s19 }
 0x1c4   : > { %v617_v45 = vadd.f32 %v616_v44, %v517_v39  ;;  %v716_v39 = vrot.slane %v711_v28, %v1651_v9 }
 0x1c5   : > { %v1720_v46 = vmax.f32 %v615_v43, 0.0 }
 0x1c6   : > { %v1724_v47 = vmax.f32 %v617_v45, 0.0  ;;  %v1794_v51 = vpop.f32.mrb[4].mxu1 }
 0x1c7   : > { %637 = vrot.lane.b32.xlu0 %v1720_v46, %s1435_s19  ;;  %667 = vrot.lane.b32.xlu1 %v1716_v40, %s1434_s18  ;;  %v1193_v48 = vpack.c.bf16 %v1720_v46, %v1716_v40  ;;  %v1799_v53 = vpop.f32.mrb[5].mxu1 }
 0x1c8   : > { %v1191_v49 = vpack.c.bf16 %v1724_v47, %v1722_v2 }
 0x1ca   : > { %v1803_v54 = vpop.f32.mrb[6].mxu1 }
 0x1cb   : > { %669 = vrot.lane.b32.xlu0 %v1720_v46, %s1434_s18  ;;  %699 = vrot.lane.b32.xlu1 %v1716_v40, %s1436_s20  ;;  %v1811_v57 = vpop.f32.mrb[7].mxu1 }
 0x1cf   : > { %701 = vrot.lane.b32.xlu0 %v1720_v46, %s1436_s20  ;;  %731 = vrot.lane.b32.xlu1 %v1716_v40, %s1437_s26 }
 0x1d3   : > { %733 = vrot.lane.b32.xlu0 %v1720_v46, %s1437_s26  ;;  %767 = vrot.lane.b32.xlu1 %v1716_v40, %s1438_s28 }
 0x1d7   : > { %769 = vrot.lane.b32.xlu0 %v1720_v46, %s1438_s28  ;;  %799 = vrot.lane.b32.xlu1 %v1716_v40, %s1439_s11 }
 0x1db   : > { %801 = vrot.lane.b32.xlu0 %v1720_v46, %s1439_s11  ;;  %831 = vrot.lane.b32.xlu1 %v1716_v40, %s1441_s29 }
 0x1df   : > { %833 = vrot.lane.b32.xlu0 %v1720_v46, %s1441_s29  ;;  %639 = vrot.lane.b32.xlu1 %v1722_v2, %s1435_s19 }
 0x1e3   : > { %641 = vrot.lane.b32.xlu0 %v1724_v47, %s1435_s19  ;;  %671 = vrot.lane.b32.xlu1 %v1722_v2, %s1434_s18  ;;  %s1143_s19 = sshll.u32 %s272_s17, 5 }
 0x1e7   : > { %673 = vrot.lane.b32.xlu0 %v1724_v47, %s1434_s18  ;;  %703 = vrot.lane.b32.xlu1 %v1722_v2, %s1436_s20 }
 0x1eb   : > { %705 = vrot.lane.b32.xlu0 %v1724_v47, %s1436_s20  ;;  %735 = vrot.lane.b32.xlu1 %v1722_v2, %s1437_s26  ;;  %s274_s20 = scalar_lea.vmem [#allocation9], %s1143_s19 }
 0x1ef   : > { %737 = vrot.lane.b32.xlu0 %v1724_v47, %s1437_s26  ;;  %863 = vrot.lane.b32.xlu1 %v1716_v40, %s1443_s10  ;;  %s1051_s26 = sshll.u32 %s274_s20, 4  ;;  %s1956_s26 = int_to_ptr.vmem [resolvable:$true] %s1051_s26 }
 0x1f0   : > { %p1363_p4 = scmp.lt.s32.totalorder %s1956_s26, %s1361_s12 }
 0x1f3   : > { %865 = vrot.lane.b32.xlu0 %v1720_v46, %s1443_s10  ;;  %771 = vrot.lane.b32.xlu1 %v1722_v2, %s1438_s28 }
 0x1f7   : > { %773 = vrot.lane.b32.xlu0 %v1724_v47, %s1438_s28  ;;  %803 = vrot.lane.b32.xlu1 %v1722_v2, %s1439_s11  ;;  %s1158_s28 = sshll.u32 %s1502_s25, 9  ;;  %s1356_s25 = scalar_lea.vmem %s1956_s26, 512 }
 0x1f8   : > { %s1961_s13 = scalar_lea.hbm %s2013_s6, %s1158_s28  ;;  %p1357_p12 = scmp.ne.s32.totalorder %s1956_s26, %s1356_s25 }
 0x1f9   : > { %p1364_p7 = scmp.lt.s32.totalorder %s1362_s14, %s1356_s25 }
 0x1fa   : > { %p1358_p2 = pnand %p1357_p12, %p2026_p1 }
 0x1fb   : > { %805 = vrot.lane.b32.xlu0 %v1724_v47, %s1439_s11  ;;  %835 = vrot.lane.b32.xlu1 %v1722_v2, %s1441_s29  ;;  %p1365_p8 = por %p1364_p7, %p1363_p4 }
 0x1fc   : > { %p1359_p3 = pneg %p1358_p2 }
 0x1fe   : > { %p1366_p11 = pnand %p1365_p8, %p1359_p3 }
 0x1ff   : > { %837 = vrot.lane.b32.xlu0 %v1724_v47, %s1441_s29  ;;  %867 = vrot.lane.b32.xlu1 %v1722_v2, %s1443_s10 }
 0x203   : > { %869 = vrot.lane.b32.xlu0 %v1724_v47, %s1443_s10  ;;  %521 = vperm.xlu1 %1299, %v290_v52   ;;  %s1965_s10 = scalar_lea.sflag [#allocation6], %s272_s17 }
 0x207   : > { %526 = vperm.xlu0 %1298, %v291_v55   ;;  %933 = vperm.xlu1 %1299, %v292_v56  }
 0x20b   : > { %938 = vperm.xlu0 %1298, %v293_v58  }
 0x235   : > { %v636_v59 = vpop.permute.xlu1 %635 }
 0x239   : > { %v638_v60 = vpop.permute.xlu0 %637  ;;  %v668_v61 = vpop.permute.xlu1 %667 }
 0x23d   : > { %v670_v62 = vpop.permute.xlu0 %669  ;;  %v700_v63 = vpop.permute.xlu1 %699 }
 0x241   : > { %v702_v3 = vpop.permute.xlu0 %701  ;;  %v732_v4 = vpop.permute.xlu1 %731 }
 0x245   : > { %v1816_v5 = vpop.permute.xlu0 %733  ;;  %v1818_v6 = vpop.permute.xlu1 %767 }
 0x249   : > { %v1820_v7 = vpop.permute.xlu0 %769  ;;  %v1822_v11 = vpop.permute.xlu1 %799 }
 0x24d   : > { %v1824_v12 = vpop.permute.xlu0 %801  ;;  %v1826_v13 = vpop.permute.xlu1 %831 }
 0x251   : > { %v1828_v0 = vpop.permute.xlu0 %833  ;;  %v640_v14 = vpop.permute.xlu1 %639 }
 0x252   : > { %v643_v18 = vsel %vm302_vm1, %v636_v59, %v640_v14  ;;  %v645_v19 = vsel %vm302_vm1, %v640_v14, %v636_v59  ;;  %v752_v14 = vrot.slane %v743_v50, %v1653_v10 }
 0x253   : > { %v659_v26 = vmul.f32 %v652_v15, %v645_v19  ;;  %v660_v29 = vmul.f32 %v656_v17, %v643_v18 }
 0x255   : > { %v642_v20 = vpop.permute.xlu0 %641  ;;  %v672_v21 = vpop.permute.xlu1 %671 }
 0x256   : > { %v644_v22 = vsel %vm302_vm1, %v638_v60, %v642_v20  ;;  %v646_v23 = vsel %vm302_vm1, %v642_v20, %v638_v60  ;;  %v675_v31 = vsel %vm325_vm0, %v668_v61, %v672_v21  ;;  %v677_v32 = vsel %vm325_vm0, %v672_v21, %v668_v61 }
 0x257   : > { %v661_v27 = vmul.f32 %v652_v15, %v646_v23  ;;  %v662_v30 = vmul.f32 %v656_v17, %v644_v22  ;;  %v691_v42 = vmul.f32 %v684_v24, %v677_v32  ;;  %v692_v43 = vmul.f32 %v688_v25, %v675_v31 }
 0x259   : > { %v674_v33 = vpop.permute.xlu0 %673  ;;  %v704_v34 = vpop.permute.xlu1 %703  ;;  %v1175_v35 = vpack.c.bf16 %v662_v30, %v660_v29  ;;  %v1177_v36 = vpack.c.bf16 %v661_v27, %v659_v26 }
 0x25a   : > { %v676_v37 = vsel %vm325_vm0, %v670_v62, %v674_v33  ;;  %v678_v38 = vsel %vm325_vm0, %v674_v33, %v670_v62  ;;  %v707_v52 = vsel %vm349_vm2, %v700_v63, %v704_v34  ;;  %v709_v55 = vsel %vm349_vm2, %v704_v34, %v700_v63 }
 0x25b   : > { %v693_v44 = vmul.f32 %v684_v24, %v678_v38  ;;  %v694_v45 = vmul.f32 %v688_v25, %v676_v37  ;;  %1176 = vmatprep.subr.bf16.mxu0 %v1175_v35  ;;  %v723_v15 = vmul.f32 %v716_v39, %v709_v55  ;;  %v724_v16 = vmul.f32 %v720_v41, %v707_v52  ;;  %v811_v35 = vld [vmem:[#allocation4 + $0x6] ss:$8 sm:$0x3]  ;;  %v843_v52 = vld [vmem:[#allocation4 + $0x7] ss:$8 sm:$0x3] }
 0x25c   : > { %1178 = vmatpush1.bf16.msra.mxu0 %v1177_v36 }
 0x25d   : > { %v706_v56 = vpop.permute.xlu0 %705  ;;  %v736_v58 = vpop.permute.xlu1 %735  ;;  %v1179_v59 = vpack.c.bf16 %v694_v45, %v692_v43  ;;  %v1181_v60 = vpack.c.bf16 %v693_v44, %v691_v42  ;;  %v816_v42 = vrot.slane %v811_v35, %v1651_v9  ;;  %v820_v43 = vrot.slane %v811_v35, %v1653_v10 }
 0x25e   : > { %v708_v61 = vsel %vm349_vm2, %v702_v3, %v706_v56  ;;  %v710_v62 = vsel %vm349_vm2, %v706_v56, %v702_v3  ;;  %v739_v63 = vsel %vm373_vm3, %v732_v4, %v736_v58  ;;  %v741_v19 = vsel %vm373_vm3, %v736_v58, %v732_v4  ;;  %v779_v4 = vld [vmem:[#allocation4 + $0x5] ss:$8 sm:$0x3] }
 0x25f   : > { %v725_v17 = vmul.f32 %v716_v39, %v710_v62  ;;  %v726_v18 = vmul.f32 %v720_v41, %v708_v61  ;;  %1180 = vmatprep.subr.bf16.mxu0 %v1179_v59  ;;  %v755_v25 = vmul.f32 %v748_v1, %v741_v19  ;;  %v756_v26 = vmul.f32 %v752_v14, %v739_v63 }
 0x260   : > { %1182 = vmatpush1.bf16.msra.mxu0 %v1181_v60  ;;  %v784_v33 = vrot.slane %v779_v4, %v1651_v9  ;;  %v788_v34 = vrot.slane %v779_v4, %v1653_v10  ;;  %v848_v60 = vrot.slane %v843_v52, %v1651_v9 }
 0x261   : > { %v738_v20 = vpop.permute.xlu0 %737  ;;  %v1866_v21 = vpop.permute.xlu1 %863  ;;  %v1183_v3 = vpack.c.bf16 %v726_v18, %v724_v16  ;;  %v1185_v22 = vpack.c.bf16 %v725_v17, %v723_v15 }
 0x262   : > { %v740_v23 = vsel %vm373_vm3, %v1816_v5, %v738_v20  ;;  %v742_v24 = vsel %vm373_vm3, %v738_v20, %v1816_v5 }
 0x263   : > { %v757_v27 = vmul.f32 %v748_v1, %v742_v24  ;;  %v758_v28 = vmul.f32 %v752_v14, %v740_v23  ;;  %1184 = vmatprep.subr.bf16.mxu0 %v1183_v3 }
 0x264   : > { %1186 = vmatpush1.bf16.msra.mxu0 %v1185_v22 }
 0x265   : > { %v1874_v29 = vpop.permute.xlu0 %865  ;;  %v772_v30 = vpop.permute.xlu1 %771  ;;  %v1187_v31 = vpack.c.bf16 %v758_v28, %v756_v26  ;;  %v1189_v32 = vpack.c.bf16 %v757_v27, %v755_v25 }
 0x266   : > { %v775_v5 = vsel %vm399_vm4, %v1818_v6, %v772_v30  ;;  %v777_v36 = vsel %vm399_vm4, %v772_v30, %v1818_v6 }
 0x267   : > { %1188 = vmatprep.subr.bf16.mxu0 %v1187_v31  ;;  %v791_v6 = vmul.f32 %v784_v33, %v775_v5  ;;  %v792_v44 = vmul.f32 %v788_v34, %v777_v36 }
 0x268   : > { %1190 = vmatpush1.bf16.msra.mxu0 %v1189_v32 }
 0x269   : > { %v774_v37 = vpop.permute.xlu0 %773  ;;  %1192 = vmatprep.subr.bf16.mxu0 %v1191_v49  ;;  %v804_v38 = vpop.permute.xlu1 %803 }
 0x26a   : > { %v776_v39 = vsel %vm399_vm4, %v1820_v7, %v774_v37  ;;  %v778_v41 = vsel %vm399_vm4, %v774_v37, %v1820_v7  ;;  %v807_v2 = vsel %vm423_vm5, %v1822_v11, %v804_v38  ;;  %v809_v47 = vsel %vm423_vm5, %v804_v38, %v1822_v11 }
 0x26b   : > { %v793_v45 = vmul.f32 %v784_v33, %v776_v39  ;;  %v794_v50 = vmul.f32 %v788_v34, %v778_v41  ;;  %v852_v11 = vrot.slane %v843_v52, %v1653_v10  ;;  %v823_v61 = vmul.f32 %v816_v42, %v807_v2  ;;  %v284_v33 = vld [vmem:[%s2011_s4] sm:$0xff] }
 0x26c   : > { %1194 = vmatpush1.bf16.msra.mxu0 %v1193_v48  ;;  %v824_v62 = vmul.f32 %v820_v43, %v809_v47  ;;  %v875_v48 = vld [vmem:[#allocation4 + $0x10] ss:$8 sm:$0x3] }
 0x26d   : > { %v806_v49 = vpop.permute.xlu0 %805  ;;  %v836_v7 = vpop.permute.xlu1 %835  ;;  %v1195_v55 = vpack.c.bf16 %v794_v50, %v792_v44  ;;  %v1197_v56 = vpack.c.bf16 %v793_v45, %v791_v6  ;;  %v880_v19 = vrot.slane %v875_v48, %v1651_v9  ;;  %v884_v20 = vrot.slane %v875_v48, %v1653_v10 }
 0x26e   : > { %v808_v58 = vsel %vm423_vm5, %v1824_v12, %v806_v49  ;;  %v810_v59 = vsel %vm423_vm5, %v806_v49, %v1824_v12  ;;  %v839_v1 = vsel %vm447_vm6, %v1826_v13, %v836_v7  ;;  %v841_v14 = vsel %vm447_vm6, %v836_v7, %v1826_v13 }
 0x26f   : > { %v825_v40 = vmul.f32 %v816_v42, %v808_v58  ;;  %v826_v46 = vmul.f32 %v820_v43, %v810_v59  ;;  %1196 = vmatprep.subr.bf16.mxu0 %v1195_v55  ;;  %v855_v3 = vmul.f32 %v848_v60, %v839_v1  ;;  %v856_v22 = vmul.f32 %v852_v11, %v841_v14 }
 0x270   : > { %1198 = vmatpush1.bf16.msra.mxu0 %v1197_v56 }
 0x271   : > { %v838_v12 = vpop.permute.xlu0 %837  ;;  %v868_v15 = vpop.permute.xlu1 %867  ;;  %v1199_v16 = vpack.c.bf16 %v826_v46, %v824_v62  ;;  %v1201_v17 = vpack.c.bf16 %v825_v40, %v823_v61 }
 0x272   : > { %v840_v18 = vsel %vm447_vm6, %v1828_v0, %v838_v12  ;;  %v842_v63 = vsel %vm447_vm6, %v838_v12, %v1828_v0  ;;  %v871_v24 = vsel %vm471_vm7, %v1866_v21, %v868_v15  ;;  %v873_v25 = vsel %vm471_vm7, %v868_v15, %v1866_v21 }
 0x273   : > { %v857_v13 = vmul.f32 %v848_v60, %v840_v18  ;;  %v858_v23 = vmul.f32 %v852_v11, %v842_v63  ;;  %1200 = vmatprep.subr.bf16.mxu0 %v1199_v16  ;;  %v887_v28 = vmul.f32 %v880_v19, %v871_v24  ;;  %v888_v4 = vmul.f32 %v884_v20, %v873_v25 }
 0x274   : > { %1202 = vmatpush1.bf16.msra.mxu0 %v1201_v17 }
 0x275   : > { %v870_v26 = vpop.permute.xlu0 %869  ;;  %v1203_v0 = vpack.c.bf16 %v858_v23, %v856_v22  ;;  %v1205_v27 = vpack.c.bf16 %v857_v13, %v855_v3 }
 0x276   : > { %v872_v9 = vsel %vm471_vm7, %v1874_v29, %v870_v26  ;;  %v874_v10 = vsel %vm471_vm7, %v870_v26, %v1874_v29  ;;  %v286_v29 = vld [vmem:[%s2011_s4 + $0x10] sm:$0xff] }
 0x277   : > { %v889_v30 = vmul.f32 %v880_v19, %v872_v9  ;;  %v890_v31 = vmul.f32 %v884_v20, %v874_v10  ;;  %1204 = vmatprep.subr.bf16.mxu0 %v1203_v0 }
 0x278   : > { %1206 = vmatpush1.bf16.msra.mxu0 %v1205_v27 }
 0x279   : > { %v1207_v21 = vpack.c.bf16 %v890_v31, %v888_v4  ;;  %v1209_v32 = vpack.c.bf16 %v889_v30, %v887_v28 }
 0x27b   : > { %1208 = vmatprep.subr.bf16.mxu0 %v1207_v21 }
 0x27c   : > { %1210 = vmatpush1.bf16.msra.mxu0 %v1209_v32 }
 0x27f   : > { %1013 = vmatmul.mubr.f32.vlgmr.msra.gmra.mrb[0].mxu0 %v284_v33 }
 0x280   : > { %1151 = vmatprep.mubr.msk.f32.mxu0 %vm941_vm9, %v287_v8 }
 0x282   : > { %v522_v34 = vpop.permute.xlu1 %521 }
 0x283   : > { %1019 = vmatmul.mubr.f32.gmra.mrb[2].mxu0 %v286_v29  ;;  %v621_v36 = vadd.f32 %v1794_v51, %v522_v34  ;;  %v623_v37 = vadd.f32 %v1799_v53, %v522_v34 }
 0x286   : > { %v527_v35 = vpop.permute.xlu0 %526  ;;  %v934_v5 = vpop.permute.xlu1 %933 }
 0x287   : > { %v1212_v38 = vadd.f32 %v934_v5, %v621_v36  ;;  %v1215_v39 = vadd.f32 %v934_v5, %v623_v37  ;;  %v627_v43 = vadd.f32 %v1803_v54, %v527_v35  ;;  %v629_v45 = vadd.f32 %v1811_v57, %v527_v35 }
 0x28a   : > { %v939_v41 = vpop.permute.xlu0 %938 }
 0x28b   : > { %v1218_v52 = vadd.f32 %v939_v41, %v627_v43  ;;  %v1221_v47 = vadd.f32 %v939_v41, %v629_v45 }
 0x352   : > { %v1014_v42 = vpop.f32.mrb[0].mxu0 }
 0x353   : > { %v1213_v6 = vadd.f32 %v1212_v38, %v1014_v42  ;;  %v1016_v44 = vpop.f32.mrb[1].mxu0 }
 0x354   : > { %v1216_v50 = vadd.f32 %v1215_v39, %v1016_v44 }
 0x355   : > { %v1029_v2 = vmax.f32 %v1213_v6, 0.0 }
 0x356   : > { %v1030_v51 = vmax.f32 %v1216_v50, 0.0  ;;  %v1020_v53 = vpop.f32.mrb[2].mxu0 }
 0x357   : > { %1033 = vst [vmem:[%s274_s20] sm:$0xff] %v1029_v2  ;;  %v1219_v49 = vadd.f32 %v1218_v52, %v1020_v53  ;;  %v1022_v7 = vpop.f32.mrb[3].mxu0 }
 0x358   : > { %1034 = vst [vmem:[%s274_s20 + $0x8] sm:$0xff] %v1030_v51  ;;  %v1222_v54 = vadd.f32 %v1221_v47, %v1022_v7 }
 0x359   : > { %v1031_v57 = vmax.f32 %v1219_v49, 0.0 }
 0x35a   : > { %v1032_v55 = vmax.f32 %v1222_v54, 0.0 }
 0x35b   : > { %1035 = vst [vmem:[%s274_s20 + $0x10] sm:$0xff] %v1031_v57 }
 0x35c   : > { %1036 = vst [vmem:[%s274_s20 + $0x18] sm:$0xff] %v1032_v55 }
 0x35d   : > { %1369 = shalt.err (!%p1366_p11)
}
 0x35e   : > { %s1370_s16 = scalar_lea.hbm %s1961_s13, 512  ;;  %s1374_s19 = scalar_lea.hbm %s2013_s6, 1024 }
 0x35f   : > { %p1371_p13 = scmp.ne.s32.totalorder %s1961_s13, %s1370_s16  ;;  %p1375_p6 = scmp.lt.u32.totalorder %s1961_s13, %s2013_s6 }
 0x360   : > { %p1376_p9 = scmp.lt.u32.totalorder %s1374_s19, %s1370_s16  ;;  %p1378_p12 = scmp.lt.u32.totalorder %s1370_s16, %s1961_s13 }
 0x361   : > { %p1372_p0 = pnand %p1371_p13, %p2026_p1 }
 0x362   : > { %p1377_p10 = por %p1376_p9, %p1375_p6 }
 0x363   : > { %p1373_p5 = pneg %p1372_p0 }
 0x364   : > { %p1379_p2 = por %p1378_p12, %p1377_p10 }
 0x366   : > { %p1380_p3 = pnand %p1379_p2, %p1373_p5 }
 0x368   : > { %1383 = shalt.err (!%p1380_p3)
}
 0x369   : > { %s1445_s11 = smov 256  }
 0x36a   : > { %1231 = dma.vmem_to_hbm [thread:$0]  (%p2026_p1), %s1956_s26, 512, %s1961_s13, %s1965_s10, %s1445_s11, %s1445_s11, %s1434_s18  }
 0x36b PF: > { %p1248_p4 = scmp.ge.s32.totalorder %s1426_s24, 2  ;;  %s1066_s29 = sand.u32 1, %s1414_s21  }
 0x36c   : > { %p2027_p7 = scmp.ne.s32.totalorder %s2018_s8, 0  ;;  %s1067_s25 = scalar_lea.sflag [#allocation6], %s1066_s29 }
 0x36e   : > { %p1241_p8 = pnand %p1248_p4, %p2027_p7 }
 0x370   : > { %1409 = dma.done.wait (!%p1241_p8), %s1067_s25, 512  }
 0x371   : > { %1411 = vsyncadd (!%p1241_p8), %s1067_s25, 4294966784  ;;  %p18_p11 = scmp.ge.s32.totalorder %s1506_s27, 4   ;;  %s2028_s21 = smov %s1418_s22 }
 0x372   : > { %s2029_s22 = smov %s1422_s23  ;;  %s2030_s23 = smov %s1517_s30 }
 0x373   : > { %s2031_s24 = smov %s1506_s27  ;;  %20 = sbr.rel (!%p18_p11) target bundleno = 5 (0x5), region = 95 }
 0x37a   :  { %1072 = vsyncpa [#allocation5], 1 }
 0x37b   :  { %1074 = vsyncpa [#allocation5 + $0x1], 1 }
 0x37c   :  { %1075 = vsyncpa [#allocation8], 1 }
 0x37d   :  { %1076 = vsyncpa [#allocation6], 1 }
 0x37e   :  { %1078 = vsyncpa [#allocation6 + $0x1], 1 }

</bundles_post_ra>
